<compile_context>
chip_gen: v6e
topology: v6e:2x2x1
jax: 0.10.0
libtpu: 0.0.40
codegen_flags: <defaults>
</compile_context>

<pallas_src>
import functools

import jax
import jax.numpy as jnp
from jax import lax
from jax.experimental import pallas as pl
from jax.experimental.pallas import tpu as pltpu


def _round_up(x: int, m: int) -> int:
    return ((x + m - 1) // m) * m


def _pick_tile(dim: int, preferred: int, align: int) -> int:
    """Largest useful tile: `preferred` for big dims, padded-to-align otherwise."""
    if dim >= preferred:
        return preferred
    return _round_up(dim, align)


def _dense_kernel(x_ref, w_ref, b_ref, o_ref, acc_ref):
    # x_ref: [tm, tk]   w_ref: [tn, tk] (PyTorch layout)   b_ref: [1, tn]
    # o_ref: [tm, tn]   acc_ref: [tm, tn] f32 accumulator (VMEM scratch)
    k = pl.program_id(2)

    @pl.when(k == 0)
    def _():
        acc_ref[...] = jnp.zeros_like(acc_ref)

    # Contract the last dim of both operands (x @ W^T) on the MXU with f32 acc.
    acc_ref[...] += lax.dot_general(
        x_ref[...],
        w_ref[...],
        dimension_numbers=(((1,), (1,)), ((), ())),
        preferred_element_type=jnp.float32,
    )

    @pl.when(k == pl.num_programs(2) - 1)
    def _():
        o_ref[...] = (acc_ref[...] + b_ref[...]).astype(o_ref.dtype)


@functools.partial(jax.jit, static_argnames=())
def dense_forward(x, weight, bias):
    """y = x @ weight.T + bias, computed in a tiled Pallas TPU kernel.

    x:      [..., input_dim]
    weight: [output_dim, input_dim]   (PyTorch nn.Linear convention)
    bias:   [output_dim]
    """
    orig_shape = x.shape
    input_dim = orig_shape[-1]
    output_dim = weight.shape[0]

    # Flatten leading dims into a single batch (M) dim, nn.Linear-style.
    x2d = x.reshape(-1, input_dim)
    M, K = x2d.shape
    N = output_dim

    # Tile sizes: MXU/lane friendly.  tm multiple of 8 (f32 sublanes),
    # tn / tk multiples of 128 (lane-dense loads and stores).
    tm = _pick_tile(M, 256, 8)
    tn = _pick_tile(N, 256, 128)
    tk = _pick_tile(K, 512, 128)

    M_pad = _round_up(M, tm)
    N_pad = _round_up(N, tn)
    K_pad = _round_up(K, tk)

    # Zero-pad to tile multiples (zeros contribute nothing to the dot product;
    # padded output rows/cols are sliced off below).  No-op when already aligned.
    if (M_pad, K_pad) != (M, K):
        x2d = jnp.pad(x2d, ((0, M_pad - M), (0, K_pad - K)))
    w = weight
    if (N_pad, K_pad) != (N, K):
        w = jnp.pad(w, ((0, N_pad - N), (0, K_pad - K)))
    b2d = bias.reshape(1, N)
    if N_pad != N:
        b2d = jnp.pad(b2d, ((0, 0), (0, N_pad - N)))

    grid = (M_pad // tm, N_pad // tn, K_pad // tk)

    # VMEM budget: double-buffered x/w/bias tiles + double-buffered output tile
    # + f32 accumulator, with headroom; capped at v7x physical VMEM (64 MiB).
    itemsize = jnp.dtype(x.dtype).itemsize
    footprint = (
        2 * (tm * tk + tn * tk) * itemsize      # x / w input double-buffers
        + 2 * tn * jnp.dtype(bias.dtype).itemsize  # bias double-buffer
        + 2 * tm * tn * itemsize                # output double-buffer
        + tm * tn * 4                           # f32 accumulator
    )
    vmem_limit = min(int(2 * footprint) + (8 << 20), 64 << 20)

    out_padded = pl.pallas_call(
        _dense_kernel,
        out_shape=jax.ShapeDtypeStruct((M_pad, N_pad), x.dtype),
        grid_spec=pltpu.PrefetchScalarGridSpec(
            num_scalar_prefetch=0,
            grid=grid,
            in_specs=[
                pl.BlockSpec((tm, tk), lambda i, j, k: (i, k)),   # x tile
                pl.BlockSpec((tn, tk), lambda i, j, k: (j, k)),   # W tile (PyTorch layout)
                pl.BlockSpec((1, tn), lambda i, j, k: (0, j)),    # bias row
            ],
            out_specs=pl.BlockSpec((tm, tn), lambda i, j, k: (i, j)),
            scratch_shapes=[pltpu.VMEM((tm, tn), jnp.float32)],
        ),
        compiler_params=pltpu.CompilerParams(
            dimension_semantics=("parallel", "parallel", "arbitrary"),
            vmem_limit_bytes=vmem_limit,
        ),
    )(x2d, w, b2d)

    out = out_padded[:M, :N]
    out = out.reshape(orig_shape[:-1] + (output_dim,))
    return out[...]  # mirror the PyTorch `[...]` (no-op)


if __name__ == "__main__":
    key = jax.random.PRNGKey(0)
    kx, kw, kb, kx2, kw2, kb2 = jax.random.split(key, 6)

    # --- Small shapes consistent with the module's forward --------------------
    batch, input_dim, output_dim = 2, 32, 64
    x = jax.random.normal(kx, (batch, input_dim), dtype=jnp.float32)
    bound = 1.0 / jnp.sqrt(jnp.float32(input_dim))
    weight = jax.random.uniform(
        kw, (output_dim, input_dim), minval=-bound, maxval=bound, dtype=jnp.float32
    )
    bias = jax.random.uniform(
        kb, (output_dim,), minval=-bound, maxval=bound, dtype=jnp.float32
    )

    y = jax.block_until_ready(dense_forward(x, weight, bias))
    y_ref = x @ weight.T + bias
    assert y.shape == (batch, output_dim)
    assert jnp.allclose(y, y_ref, atol=1e-5, rtol=1e-5)

    # --- Multi-tile grid check (exercises K accumulation + N padding) ---------
    M2, K2, N2 = 512, 1024, 384
    x2 = jax.random.normal(kx2, (M2, K2), dtype=jnp.float32)
    bound2 = 1.0 / jnp.sqrt(jnp.float32(K2))
    w2 = jax.random.uniform(kw2, (N2, K2), minval=-bound2, maxval=bound2,
                            dtype=jnp.float32)
    b2 = jax.random.uniform(kb2, (N2,), minval=-bound2, maxval=bound2,
                            dtype=jnp.float32)

    y2 = jax.block_until_ready(dense_forward(x2, w2, b2))
    y2_ref = x2 @ w2.T + b2
    assert y2.shape == (M2, N2)
    assert jnp.allclose(y2, y2_ref, atol=1e-3, rtol=1e-4)

    print("KERNEL_OK")
</pallas_src>

<mosaic_0001>
module attributes {stable_mosaic.version = 11 : i64} {
  func.func @_dense_kernel(%arg0: i32, %arg1: i32, %arg2: i32, %arg3: memref<8x128xf32, #tpu.memory_space<vmem>>, %arg4: memref<128x128xf32, #tpu.memory_space<vmem>>, %arg5: memref<1x128xf32, #tpu.memory_space<vmem>>, %arg6: memref<8x128xf32, #tpu.memory_space<vmem>>, %arg7: memref<8x128xf32, #tpu.memory_space<vmem>>) attributes {dimension_semantics = [#tpu.dimension_semantics<parallel>, #tpu.dimension_semantics<parallel>, #tpu.dimension_semantics<arbitrary>], iteration_bounds = array<i64: 1, 1, 1>, scalar_prefetch = 0 : i64, scratch_operands = 1 : i64, tpu.core_type = #tpu.core_type<tc>, window_params = [{transform_indices = @transform_0, window_bounds = array<i64: 8, 128>}, {transform_indices = @transform_1, window_bounds = array<i64: 128, 128>}, {transform_indices = @transform_2, window_bounds = array<i64: 1, 128>}, {transform_indices = @transform_3, window_bounds = array<i64: 8, 128>}]} {
    %c0_i32 = arith.constant 0 : i32
    %0 = arith.cmpi eq, %arg2, %c0_i32 : i32
    %1 = arith.extui %0 : i1 to i32
    %c0_i32_0 = arith.constant 0 : i32
    %2 = arith.cmpi ne, %1, %c0_i32_0 : i32
    scf.if %2 {
      %cst_10 = arith.constant 0.000000e+00 : f32
      %12 = vector.broadcast %cst_10 : f32 to vector<8x128xf32>
      %c0_11 = arith.constant 0 : index
      %c0_12 = arith.constant 0 : index
      %13 = vector.load %arg7[%c0_11, %c0_12] : memref<8x128xf32, #tpu.memory_space<vmem>>, vector<8x128xf32>
      tpu.vector_store %arg7[%c0_11, %c0_12], %12 {strides = array<i32>} : memref<8x128xf32, #tpu.memory_space<vmem>>, vector<8x128xf32>,
    } else {
    }
    %c0 = arith.constant 0 : index
    %c0_1 = arith.constant 0 : index
    %3 = vector.load %arg7[%c0, %c0_1] : memref<8x128xf32, #tpu.memory_space<vmem>>, vector<8x128xf32>
    %c0_2 = arith.constant 0 : index
    %c0_3 = arith.constant 0 : index
    %4 = vector.load %arg3[%c0_2, %c0_3] : memref<8x128xf32, #tpu.memory_space<vmem>>, vector<8x128xf32>
    %c0_4 = arith.constant 0 : index
    %c0_5 = arith.constant 0 : index
    %5 = vector.load %arg4[%c0_4, %c0_5] : memref<128x128xf32, #tpu.memory_space<vmem>>, vector<128x128xf32>
    %cst = arith.constant dense<0.000000e+00> : vector<8x128xf32>
    %6 = tpu.matmul %4, %5, %cst {dimension_numbers = #tpu.dot_dimension_numbers<[1], [1], [0], [0], [0, 0, 1, 0], [], []>} : vector<8x128xf32>, vector<128x128xf32>, vector<8x128xf32> -> vector<8x128xf32>
    %7 = arith.addf %3, %6 : vector<8x128xf32>
    %c0_6 = arith.constant 0 : index
    %c0_7 = arith.constant 0 : index
    %8 = vector.load %arg7[%c0_6, %c0_7] : memref<8x128xf32, #tpu.memory_space<vmem>>, vector<8x128xf32>
    tpu.vector_store %arg7[%c0_6, %c0_7], %7 {strides = array<i32>} : memref<8x128xf32, #tpu.memory_space<vmem>>, vector<8x128xf32>,
    %c0_i32_8 = arith.constant 0 : i32
    %9 = arith.cmpi eq, %arg2, %c0_i32_8 : i32
    %10 = arith.extui %9 : i1 to i32
    %c0_i32_9 = arith.constant 0 : i32
    %11 = arith.cmpi ne, %10, %c0_i32_9 : i32
    scf.if %11 {
      %c0_10 = arith.constant 0 : index
      %c0_11 = arith.constant 0 : index
      %12 = vector.load %arg7[%c0_10, %c0_11] : memref<8x128xf32, #tpu.memory_space<vmem>>, vector<8x128xf32>
      %c0_12 = arith.constant 0 : index
      %c0_13 = arith.constant 0 : index
      %13 = vector.load %arg5[%c0_12, %c0_13] : memref<1x128xf32, #tpu.memory_space<vmem>>, vector<1x128xf32>
      %14 = vector.broadcast %13 : vector<1x128xf32> to vector<8x128xf32>
      %15 = arith.addf %12, %14 : vector<8x128xf32>
      %c0_14 = arith.constant 0 : index
      %c0_15 = arith.constant 0 : index
      %16 = vector.load %arg6[%c0_14, %c0_15] : memref<8x128xf32, #tpu.memory_space<vmem>>, vector<8x128xf32>
      tpu.vector_store %arg6[%c0_14, %c0_15], %15 {strides = array<i32>} : memref<8x128xf32, #tpu.memory_space<vmem>>, vector<8x128xf32>,
    } else {
    }
    return
  }
  func.func @transform_0(%arg0: i32, %arg1: i32, %arg2: i32) -> (i32, i32) {
    %c0_i32 = arith.constant 0 : i32
    return %arg0, %arg2 : i32, i32
  }
  func.func @transform_1(%arg0: i32, %arg1: i32, %arg2: i32) -> (i32, i32) {
    %c0_i32 = arith.constant 0 : i32
    return %arg1, %arg2 : i32, i32
  }
  func.func @transform_2(%arg0: i32, %arg1: i32, %arg2: i32) -> (i32, i32) {
    %c0_i32 = arith.constant 0 : i32
    %c0_i32_0 = arith.constant 0 : i32
    return %c0_i32, %arg1 : i32, i32
  }
  func.func @transform_3(%arg0: i32, %arg1: i32, %arg2: i32) -> (i32, i32) {
    %c0_i32 = arith.constant 0 : i32
    return %arg0, %arg1 : i32, i32
  }
}

</mosaic_0001>

<bundles_post_ra>
// kernel: dense_forward.1
= control target key start
LH: loop header
LB: loop body
LE: loop exit
PB: predicated region body
PF: predicated region fallthrough
CT: control target
= control target key end

     0   :  { %v181_v0 = vmov 0.0   ;;  %vm182_vm0 = vmmov 0   ;;  %s260_s1 = inlined_call_operand.vmem [shape: f32[128,128], index: 1, kind: input, shape index: {}]   ;;  %s261_s0 = inlined_call_operand.vmem [shape: f32[8,128], index: 0, kind: input, shape index: {}]   ;;  %s262_s2 = inlined_call_operand.vmem [shape: f32[1,128], index: 2, kind: input, shape index: {}]   ;;  %s263_s3 = inlined_call_operand.vmem [shape: f32[8,128], index: 3, kind: output, shape index: {}]  }
   0x1   :  { %144 = vmatprep.subr.mxu0 %v181_v0  ;;  %v36_v1 = vld [vmem:[%s260_s1 + $0x78] sm:$0xff]  ;;  %176 = vmatprep.mubr.msk.f32.mxu0 %vm182_vm0, %v181_v0  ;;  %v35_v2 = vld [vmem:[%s260_s1 + $0x70] sm:$0xff]  ;;  %v34_v3 = vld [vmem:[%s260_s1 + $0x68] sm:$0xff] }
   0x2   :  { %145 = vmatpush3.xpose.msra.mxu0 %v36_v1  ;;  %v33_v4 = vld [vmem:[%s260_s1 + $0x60] sm:$0xff]  ;;  %v32_v5 = vld [vmem:[%s260_s1 + $0x58] sm:$0xff]  ;;  %v31_v6 = vld [vmem:[%s260_s1 + $0x50] sm:$0xff] }
   0x3   :  { %146 = vmatprep.subr.mxu0 %v181_v0  ;;  %v30_v7 = vld [vmem:[%s260_s1 + $0x48] sm:$0xff]  ;;  %v29_v8 = vld [vmem:[%s260_s1 + $0x40] sm:$0xff]  ;;  %v28_v9 = vld [vmem:[%s260_s1 + $0x38] sm:$0xff] }
   0x4   :  { %v27_v10 = vld [vmem:[%s260_s1 + $0x30] sm:$0xff]  ;;  %v26_v11 = vld [vmem:[%s260_s1 + $0x28] sm:$0xff]  ;;  %v25_v12 = vld [vmem:[%s260_s1 + $0x20] sm:$0xff] }
   0x5   :  { %v24_v13 = vld [vmem:[%s260_s1 + $0x18] sm:$0xff]  ;;  %v23_v14 = vld [vmem:[%s260_s1 + $0x10] sm:$0xff]  ;;  %v22_v15 = vld [vmem:[%s260_s1 + $0x8] sm:$0xff] }
   0x6   :  { %147 = vmatpush3.xpose.msra.mxu0 %v35_v2  ;;  %v21_v16 = vld [vmem:[%s260_s1] sm:$0xff] }
   0x7   :  { %148 = vmatprep.subr.mxu0 %v181_v0  ;;  %v20_v17 = vld [vmem:[%s261_s0] sm:$0xff] }
   0x8   :  { %v126_v18 = vld [vmem:[%s262_s2] ss:$0 sm:$0xff] }
   0xa   :  { %149 = vmatpush3.xpose.msra.mxu0 %v34_v3 }
   0xb   :  { %150 = vmatprep.subr.mxu0 %v181_v0 }
   0xe   :  { %151 = vmatpush3.xpose.msra.mxu0 %v33_v4 }
   0xf   :  { %152 = vmatprep.subr.mxu0 %v181_v0 }
  0x12   :  { %153 = vmatpush3.xpose.msra.mxu0 %v32_v5 }
  0x13   :  { %154 = vmatprep.subr.mxu0 %v181_v0 }
  0x16   :  { %155 = vmatpush3.xpose.msra.mxu0 %v31_v6 }
  0x17   :  { %156 = vmatprep.subr.mxu0 %v181_v0 }
  0x1a   :  { %157 = vmatpush3.xpose.msra.mxu0 %v30_v7 }
  0x1b   :  { %158 = vmatprep.subr.mxu0 %v181_v0 }
  0x1e   :  { %159 = vmatpush3.xpose.msra.mxu0 %v29_v8 }
  0x1f   :  { %160 = vmatprep.subr.mxu0 %v181_v0 }
  0x22   :  { %161 = vmatpush3.xpose.msra.mxu0 %v28_v9 }
  0x23   :  { %162 = vmatprep.subr.mxu0 %v181_v0 }
  0x26   :  { %163 = vmatpush3.xpose.msra.mxu0 %v27_v10 }
  0x27   :  { %164 = vmatprep.subr.mxu0 %v181_v0 }
  0x2a   :  { %165 = vmatpush3.xpose.msra.mxu0 %v26_v11 }
  0x2b   :  { %166 = vmatprep.subr.mxu0 %v181_v0 }
  0x2e   :  { %167 = vmatpush3.xpose.msra.mxu0 %v25_v12 }
  0x2f   :  { %168 = vmatprep.subr.mxu0 %v181_v0 }
  0x32   :  { %169 = vmatpush3.xpose.msra.mxu0 %v24_v13 }
  0x33   :  { %170 = vmatprep.subr.mxu0 %v181_v0 }
  0x36   :  { %171 = vmatpush3.xpose.msra.mxu0 %v23_v14 }
  0x37   :  { %172 = vmatprep.subr.mxu0 %v181_v0 }
  0x3a   :  { %173 = vmatpush3.xpose.msra.mxu0 %v22_v15 }
  0x3b   :  { %174 = vmatprep.subr.mxu0 %v181_v0 }
  0x3e   :  { %175 = vmatpush3.xpose.msra.mxu0 %v21_v16 }
  0x41   :  { %177 = vmatmul.mubr.f32.vlgmr.msra.gmra.mxu0 %v20_v17 }
 0x101   :  { %v103_v19 = vpop.f32.mrf.mxu0 }
 0x102   :  { %v120_v20 = vadd.f32 %v126_v18, %v103_v19 }
 0x103   :  { %v178_v21 = vpop.f32.mrf.mxu0 }
 0x104   :  { %121 = vst [vmem:[%s263_s3] sm:$0xff] %v120_v20 }

</bundles_post_ra>
